<compile_context>
chip_gen: v7x
topology: tpu7x:2x2x1
jax: 0.10.0
libtpu: 0.0.40
codegen_flags: <defaults>
</compile_context>

<pallas_src>
import functools

import jax
import jax.numpy as jnp
import numpy as np
from jax.experimental import pallas as pl
from jax.experimental.pallas import tpu as pltpu

_LOG_SMOOTH = 1e-10
_DICE_SMOOTH = 1e-5


def _cdiv(a, b):
    return -(-a // b)


def _focal_dc_kernel(x_ref, t_ref, tp_ref, fp_ref, fn_ref, foc_ref, *, hw, masked):
    """Per (batch, shard, spatial-tile) step.

    x_ref:  (C, T)   logits tile (native dtype, cast to f32 here)
    t_ref:  (1, T)   int32 class-index tile
    tp/fp/fn_ref: (C, 1) per-class accumulators (resident across the tile axis)
    foc_ref: (1, 1)  focal-CE sum accumulator
    """
    s = pl.program_id(2)

    @pl.when(s == 0)
    def _init():
        tp_ref[...] = jnp.zeros_like(tp_ref)
        fp_ref[...] = jnp.zeros_like(fp_ref)
        fn_ref[...] = jnp.zeros_like(fn_ref)
        foc_ref[...] = jnp.zeros_like(foc_ref)

    x = x_ref[...].astype(jnp.float32)          # (C, T) — all math stays f32
    t = t_ref[...].astype(jnp.int32)            # (1, T)
    C, T = x.shape

    if masked:
        # Global spatial index of each lane in this tile; lanes >= hw are the
        # (undefined) tail of a partial block and must not contribute.
        start = (pl.program_id(1) * pl.num_programs(2) + s) * T
        lane = jax.lax.broadcasted_iota(jnp.int32, (1, T), 1)
        valid = (start + lane) < hw             # (1, T) bool
        x = jnp.where(valid, x, 0.0)            # keep garbage lanes finite
    else:
        valid = None

    # Softmax over the channel (sublane) axis; one reciprocal per pixel
    # instead of C divides (exact reciprocal keeps the 1e-4 tolerance).
    m = jnp.max(x, axis=0, keepdims=True)
    e = jnp.exp(x - m)
    denom = jnp.sum(e, axis=0, keepdims=True)   # (1, T)
    p = e * pl.reciprocal(denom)                # (C, T)

    cls = jax.lax.broadcasted_iota(jnp.int32, (C, T), 0)
    is_t = cls == t                             # (C, T) boolean one-hot

    if masked:
        is_t = jnp.logical_and(is_t, valid)
        p_all = jnp.where(valid, p, 0.0)
    else:
        p_all = p

    # Fused dice statistics: a single masked-p tensor feeds tp, fp, fn and p_t.
    pm = jnp.where(is_t, p, 0.0)                # p at the target class, else 0
    onehot = is_t.astype(jnp.float32)

    sum_pm = jnp.sum(pm, axis=1, keepdims=True)                       # (C, 1)
    tp_ref[...] += sum_pm
    fp_ref[...] += jnp.sum(p_all, axis=1, keepdims=True) - sum_pm
    fn_ref[...] += jnp.sum(onehot, axis=1, keepdims=True) - sum_pm

    # Focal CE: -(1 - p_t)^2 * log(p_t + eps); gamma==2 -> q*q (one VPU mul).
    p_t = jnp.sum(pm, axis=0, keepdims=True)                          # (1, T)
    q = 1.0 - p_t
    foc = q * q * (-jnp.log(p_t + _LOG_SMOOTH))
    if masked:
        foc = jnp.where(valid, foc, 0.0)
    foc_ref[...] += jnp.sum(foc, axis=1, keepdims=True)               # (1, 1)


@functools.partial(jax.jit, static_argnames=("tile",))
def focal_dc_loss(net_output, target, tile=None):
    """net_output: (B, C, H, W) float; target: (B, 1, H, W) int class indices."""
    B, C, H, W = net_output.shape
    HW = H * W
    xbytes = jnp.dtype(net_output.dtype).itemsize

    # --- static tiling decisions (shapes are static under jit) ---------------
    hw128 = _cdiv(HW, 128) * 128
    # Budget VMEM explicitly: the logits block is double-buffered by the
    # pipeline, so keep it <= ~4 MiB (safe even under the v5e 16 MiB default).
    max_block_bytes = 4 << 20
    cap = max(128, ((max_block_bytes // (xbytes * C)) // 128) * 128)
    if tile is None:
        tile = min(hw128, cap)
    else:
        tile = max(128, min((int(tile) // 128) * 128, hw128, cap))

    n_tiles = _cdiv(HW, tile)
    # If a single batch element would occupy the whole grid, split spatially so
    # both TensorCores (v7x) get work via the "parallel" shard axis.
    if B == 1 and n_tiles == 1 and tile >= 256:
        tile = _cdiv(_cdiv(HW, 2), 128) * 128
        n_tiles = _cdiv(HW, tile)

    # Two shards only when it needs no extra padding tiles (even tile count);
    # this guarantees only the global last tile is partial -> no fully-OOB
    # blocks and no host-side pad copy.
    n_shards = 2 if (n_tiles >= 2 and n_tiles % 2 == 0) else 1
    tiles_per_shard = n_tiles // n_shards
    masked = (n_tiles * tile) != HW

    # Ship logits in their native dtype (cast to f32 inside the kernel) and
    # targets as int32 class indices (reshape is a free metadata op).
    x = net_output.reshape(B, C, HW)
    t = target.reshape(B, 1, HW).astype(jnp.int32)

    kernel = functools.partial(_focal_dc_kernel, hw=HW, masked=masked)

    def in_map(b, h, s):
        return (b, 0, h * tiles_per_shard + s)

    def acc_map(b, h, s):
        return (b, h, 0, 0)

    out_shape = (
        jax.ShapeDtypeStruct((B, n_shards, C, 1), jnp.float32),   # tp
        jax.ShapeDtypeStruct((B, n_shards, C, 1), jnp.float32),   # fp
        jax.ShapeDtypeStruct((B, n_shards, C, 1), jnp.float32),   # fn
        jax.ShapeDtypeStruct((B, n_shards, 1, 1), jnp.float32),   # focal sum
    )

    tp, fp, fn, foc = pl.pallas_call(
        kernel,
        out_shape=out_shape,
        grid=(B, n_shards, tiles_per_shard),
        in_specs=[
            pl.BlockSpec((None, C, tile), in_map),
            pl.BlockSpec((None, 1, tile), in_map),
        ],
        out_specs=[
            pl.BlockSpec((None, None, C, 1), acc_map),
            pl.BlockSpec((None, None, C, 1), acc_map),
            pl.BlockSpec((None, None, C, 1), acc_map),
            pl.BlockSpec((None, None, 1, 1), acc_map),
        ],
        compiler_params=pltpu.CompilerParams(
            dimension_semantics=("parallel", "parallel", "arbitrary")),
    )(x, t)

    tp = jnp.sum(tp[..., 0], axis=1)   # (B, C): fold the shard axis
    fp = jnp.sum(fp[..., 0], axis=1)
    fn = jnp.sum(fn[..., 0], axis=1)

    # SoftDiceLoss combine (batch_dice=False, do_bg=False, smooth=1e-5)
    nominator = 2.0 * tp + _DICE_SMOOTH
    denominator = jnp.clip(2.0 * tp + fp + fn + _DICE_SMOOTH, 1e-8, None)
    dc = nominator / denominator
    dc = dc[:, 1:]                     # drop background class
    dc_loss = -jnp.mean(dc)

    # focal CE mean over the (B, 1, H, W) elements (original, unpadded count)
    ce_loss = jnp.sum(foc) / (B * HW)

    return dc_loss + ce_loss


def _reference_loss(net_output, target):
    """Pure-JAX reference of the same forward pass."""
    B, C, H, W = net_output.shape
    x = net_output.astype(jnp.float32)
    t = target.astype(jnp.int32)
    p = jax.nn.softmax(x, axis=1)
    onehot = (jnp.arange(C, dtype=jnp.int32)[None, :, None, None] == t).astype(
        jnp.float32)
    tp = jnp.sum(p * onehot, axis=(2, 3))
    fp = jnp.sum(p * (1.0 - onehot), axis=(2, 3))
    fn = jnp.sum((1.0 - p) * onehot, axis=(2, 3))
    dc = (2.0 * tp + _DICE_SMOOTH) / jnp.clip(
        2.0 * tp + fp + fn + _DICE_SMOOTH, 1e-8, None)
    dc_loss = -jnp.mean(dc[:, 1:])
    p_t = jnp.take_along_axis(p, t, axis=1)              # (B, 1, H, W)
    logp = jnp.log(p_t + _LOG_SMOOTH)
    ce_loss = jnp.mean(((1.0 - p_t) ** 2.0) * (-logp))
    return dc_loss + ce_loss


if __name__ == "__main__":
    key = jax.random.PRNGKey(0)

    # Cover: exact-fit (auto tile), ragged last tile (masked, no pad),
    # multi-tile + 2-shard masked case (forced small tile), B==1 auto split,
    # and a channel count that is not a multiple of the sublane width.
    cases = [
        dict(B=2, C=4, H=16, W=16, tile=None),
        dict(B=2, C=4, H=20, W=20, tile=None),
        dict(B=1, C=4, H=20, W=20, tile=128),
        dict(B=1, C=4, H=16, W=16, tile=None),
        dict(B=1, C=3, H=12, W=20, tile=None),
    ]
    for cfg in cases:
        key, k1, k2 = jax.random.split(key, 3)
        B, C, H, W = cfg["B"], cfg["C"], cfg["H"], cfg["W"]
        net_output = jax.random.normal(k1, (B, C, H, W), dtype=jnp.float32) * 2.0
        target = jax.random.randint(k2, (B, 1, H, W), 0, C, dtype=jnp.int32)

        loss = jax.block_until_ready(
            focal_dc_loss(net_output, target, tile=cfg["tile"]))
        ref = jax.block_until_ready(_reference_loss(net_output, target))
        np.testing.assert_allclose(np.asarray(loss), np.asarray(ref),
                                   rtol=1e-4, atol=1e-4)

    print("KERNEL_OK")
</pallas_src>

<mosaic_0001>
module attributes {stable_mosaic.version = 11 : i64} {
  func.func @_focal_dc_kernel(%arg0: i32, %arg1: i32, %arg2: i32, %arg3: memref<1x4x256xf32, #tpu.memory_space<vmem>>, %arg4: memref<1x1x256xi32, #tpu.memory_space<vmem>>, %arg5: memref<1x1x4x1xf32, #tpu.memory_space<vmem>>, %arg6: memref<1x1x4x1xf32, #tpu.memory_space<vmem>>, %arg7: memref<1x1x4x1xf32, #tpu.memory_space<vmem>>, %arg8: memref<1x1x1x1xf32, #tpu.memory_space<vmem>>) attributes {dimension_semantics = [#tpu.dimension_semantics<parallel>, #tpu.dimension_semantics<parallel>, #tpu.dimension_semantics<arbitrary>], iteration_bounds = array<i64: 2, 1, 1>, scalar_prefetch = 0 : i64, scratch_operands = 0 : i64, tpu.core_type = #tpu.core_type<tc>, window_params = [{transform_indices = @transform_0, window_bounds = array<i64: 1, 4, 256>}, {transform_indices = @transform_1, window_bounds = array<i64: 1, 1, 256>}, {transform_indices = @transform_2, window_bounds = array<i64: 1, 1, 4, 1>}, {transform_indices = @transform_3, window_bounds = array<i64: 1, 1, 4, 1>}, {transform_indices = @transform_4, window_bounds = array<i64: 1, 1, 4, 1>}, {transform_indices = @transform_5, window_bounds = array<i64: 1, 1, 1, 1>}]} {
    %c0_i32 = arith.constant 0 : i32
    %0 = arith.cmpi eq, %arg2, %c0_i32 : i32
    %1 = arith.extui %0 : i1 to i32
    %c0_i32_0 = arith.constant 0 : i32
    %2 = arith.cmpi ne, %1, %c0_i32_0 : i32
    scf.if %2 {
      %cst_48 = arith.constant 0.000000e+00 : f32
      %69 = vector.broadcast %cst_48 : f32 to vector<4x1xf32>
      %c0_49 = arith.constant 0 : index
      %c0_50 = arith.constant 0 : index
      %c0_51 = arith.constant 0 : index
      %c0_52 = arith.constant 0 : index
      %70 = vector.load %arg5[%c0_49, %c0_50, %c0_51, %c0_52] : memref<1x1x4x1xf32, #tpu.memory_space<vmem>>, vector<1x1x4x1xf32>
      %71 = vector.shape_cast %70 : vector<1x1x4x1xf32> to vector<4x1xf32>
      %72 = vector.shape_cast %69 : vector<4x1xf32> to vector<1x1x4x1xf32>
      tpu.vector_store %arg5[%c0_49, %c0_50, %c0_51, %c0_52], %72 {strides = array<i32>} : memref<1x1x4x1xf32, #tpu.memory_space<vmem>>, vector<1x1x4x1xf32>,
      %cst_53 = arith.constant 0.000000e+00 : f32
      %73 = vector.broadcast %cst_53 : f32 to vector<4x1xf32>
      %c0_54 = arith.constant 0 : index
      %c0_55 = arith.constant 0 : index
      %c0_56 = arith.constant 0 : index
      %c0_57 = arith.constant 0 : index
      %74 = vector.load %arg6[%c0_54, %c0_55, %c0_56, %c0_57] : memref<1x1x4x1xf32, #tpu.memory_space<vmem>>, vector<1x1x4x1xf32>
      %75 = vector.shape_cast %74 : vector<1x1x4x1xf32> to vector<4x1xf32>
      %76 = vector.shape_cast %73 : vector<4x1xf32> to vector<1x1x4x1xf32>
      tpu.vector_store %arg6[%c0_54, %c0_55, %c0_56, %c0_57], %76 {strides = array<i32>} : memref<1x1x4x1xf32, #tpu.memory_space<vmem>>, vector<1x1x4x1xf32>,
      %cst_58 = arith.constant 0.000000e+00 : f32
      %77 = vector.broadcast %cst_58 : f32 to vector<4x1xf32>
      %c0_59 = arith.constant 0 : index
      %c0_60 = arith.constant 0 : index
      %c0_61 = arith.constant 0 : index
      %c0_62 = arith.constant 0 : index
      %78 = vector.load %arg7[%c0_59, %c0_60, %c0_61, %c0_62] : memref<1x1x4x1xf32, #tpu.memory_space<vmem>>, vector<1x1x4x1xf32>
      %79 = vector.shape_cast %78 : vector<1x1x4x1xf32> to vector<4x1xf32>
      %80 = vector.shape_cast %77 : vector<4x1xf32> to vector<1x1x4x1xf32>
      tpu.vector_store %arg7[%c0_59, %c0_60, %c0_61, %c0_62], %80 {strides = array<i32>} : memref<1x1x4x1xf32, #tpu.memory_space<vmem>>, vector<1x1x4x1xf32>,
      %cst_63 = arith.constant 0.000000e+00 : f32
      %81 = vector.broadcast %cst_63 : f32 to vector<1x1xf32>
      %c0_64 = arith.constant 0 : index
      %c0_65 = arith.constant 0 : index
      %c0_66 = arith.constant 0 : index
      %c0_67 = arith.constant 0 : index
      %82 = vector.load %arg8[%c0_64, %c0_65, %c0_66, %c0_67] : memref<1x1x1x1xf32, #tpu.memory_space<vmem>>, vector<1x1x1x1xf32>
      %83 = vector.shape_cast %82 : vector<1x1x1x1xf32> to vector<1x1xf32>
      %84 = vector.shape_cast %81 : vector<1x1xf32> to vector<1x1x1x1xf32>
      tpu.vector_store %arg8[%c0_64, %c0_65, %c0_66, %c0_67], %84 {strides = array<i32>} : memref<1x1x1x1xf32, #tpu.memory_space<vmem>>, vector<1x1x1x1xf32>,
    } else {
    }
    %c0 = arith.constant 0 : index
    %c0_1 = arith.constant 0 : index
    %c0_2 = arith.constant 0 : index
    %3 = vector.load %arg3[%c0, %c0_1, %c0_2] : memref<1x4x256xf32, #tpu.memory_space<vmem>>, vector<1x4x256xf32>
    %4 = vector.shape_cast %3 : vector<1x4x256xf32> to vector<4x256xf32>
    %c0_3 = arith.constant 0 : index
    %c0_4 = arith.constant 0 : index
    %c0_5 = arith.constant 0 : index
    %5 = vector.load %arg4[%c0_3, %c0_4, %c0_5] : memref<1x1x256xi32, #tpu.memory_space<vmem>>, vector<1x1x256xi32>
    %6 = vector.shape_cast %5 : vector<1x1x256xi32> to vector<1x256xi32>
    %cst = arith.constant dense<0xFF800000> : vector<256xf32>
    %7 = vector.multi_reduction <maximumf>, %4, %cst [0] : vector<4x256xf32> to vector<256xf32>
    %8 = vector.shape_cast %7 : vector<256xf32> to vector<1x256xf32>
    %9 = vector.broadcast %8 : vector<1x256xf32> to vector<4x256xf32>
    %10 = arith.subf %4, %9 : vector<4x256xf32>
    %11 = math.exp %10 : vector<4x256xf32>
    %cst_6 = arith.constant dense<0.000000e+00> : vector<256xf32>
    %12 = vector.multi_reduction <add>, %11, %cst_6 [0] : vector<4x256xf32> to vector<256xf32>
    %13 = vector.shape_cast %12 : vector<256xf32> to vector<1x256xf32>
    %14 = tpu.reciprocal %13 : vector<1x256xf32> -> vector<1x256xf32>
    %15 = vector.broadcast %14 : vector<1x256xf32> to vector<4x256xf32>
    %16 = arith.mulf %11, %15 : vector<4x256xf32>
    %17 = tpu.iota {dimensions = array<i32: 0>} : vector<4x256xi32>
    %18 = vector.broadcast %6 : vector<1x256xi32> to vector<4x256xi32>
    %19 = arith.cmpi eq, %17, %18 : vector<4x256xi32>
    %cst_7 = arith.constant 0.000000e+00 : f32
    %20 = vector.broadcast %cst_7 : f32 to vector<4x256xf32>
    %21 = arith.select %19, %16, %20 : vector<4x256xi1>, vector<4x256xf32>
    %22 = arith.extui %19 : vector<4x256xi1> to vector<4x256xi32>
    %23 = arith.sitofp %22 : vector<4x256xi32> to vector<4x256xf32>
    %cst_8 = arith.constant dense<0.000000e+00> : vector<4xf32>
    %24 = vector.multi_reduction <add>, %21, %cst_8 [1] : vector<4x256xf32> to vector<4xf32>
    %25 = vector.shape_cast %24 : vector<4xf32> to vector<4x1xf32>
    %c0_9 = arith.constant 0 : index
    %c0_10 = arith.constant 0 : index
    %c0_11 = arith.constant 0 : index
    %c0_12 = arith.constant 0 : index
    %26 = vector.load %arg5[%c0_9, %c0_10, %c0_11, %c0_12] : memref<1x1x4x1xf32, #tpu.memory_space<vmem>>, vector<1x1x4x1xf32>
    %27 = vector.shape_cast %26 : vector<1x1x4x1xf32> to vector<4x1xf32>
    %28 = arith.addf %27, %25 : vector<4x1xf32>
    %c0_13 = arith.constant 0 : index
    %c0_14 = arith.constant 0 : index
    %c0_15 = arith.constant 0 : index
    %c0_16 = arith.constant 0 : index
    %29 = vector.load %arg5[%c0_13, %c0_14, %c0_15, %c0_16] : memref<1x1x4x1xf32, #tpu.memory_space<vmem>>, vector<1x1x4x1xf32>
    %30 = vector.shape_cast %29 : vector<1x1x4x1xf32> to vector<4x1xf32>
    %31 = vector.shape_cast %28 : vector<4x1xf32> to vector<1x1x4x1xf32>
    tpu.vector_store %arg5[%c0_13, %c0_14, %c0_15, %c0_16], %31 {strides = array<i32>} : memref<1x1x4x1xf32, #tpu.memory_space<vmem>>, vector<1x1x4x1xf32>,
    %c0_17 = arith.constant 0 : index
    %c0_18 = arith.constant 0 : index
    %c0_19 = arith.constant 0 : index
    %c0_20 = arith.constant 0 : index
    %32 = vector.load %arg6[%c0_17, %c0_18, %c0_19, %c0_20] : memref<1x1x4x1xf32, #tpu.memory_space<vmem>>, vector<1x1x4x1xf32>
    %33 = vector.shape_cast %32 : vector<1x1x4x1xf32> to vector<4x1xf32>
    %cst_21 = arith.constant dense<0.000000e+00> : vector<4xf32>
    %34 = vector.multi_reduction <add>, %16, %cst_21 [1] : vector<4x256xf32> to vector<4xf32>
    %35 = vector.shape_cast %34 : vector<4xf32> to vector<4x1xf32>
    %36 = arith.subf %35, %25 : vector<4x1xf32>
    %37 = arith.addf %33, %36 : vector<4x1xf32>
    %c0_22 = arith.constant 0 : index
    %c0_23 = arith.constant 0 : index
    %c0_24 = arith.constant 0 : index
    %c0_25 = arith.constant 0 : index
    %38 = vector.load %arg6[%c0_22, %c0_23, %c0_24, %c0_25] : memref<1x1x4x1xf32, #tpu.memory_space<vmem>>, vector<1x1x4x1xf32>
    %39 = vector.shape_cast %38 : vector<1x1x4x1xf32> to vector<4x1xf32>
    %40 = vector.shape_cast %37 : vector<4x1xf32> to vector<1x1x4x1xf32>
    tpu.vector_store %arg6[%c0_22, %c0_23, %c0_24, %c0_25], %40 {strides = array<i32>} : memref<1x1x4x1xf32, #tpu.memory_space<vmem>>, vector<1x1x4x1xf32>,
    %c0_26 = arith.constant 0 : index
    %c0_27 = arith.constant 0 : index
    %c0_28 = arith.constant 0 : index
    %c0_29 = arith.constant 0 : index
    %41 = vector.load %arg7[%c0_26, %c0_27, %c0_28, %c0_29] : memref<1x1x4x1xf32, #tpu.memory_space<vmem>>, vector<1x1x4x1xf32>
    %42 = vector.shape_cast %41 : vector<1x1x4x1xf32> to vector<4x1xf32>
    %cst_30 = arith.constant dense<0.000000e+00> : vector<4xf32>
    %43 = vector.multi_reduction <add>, %23, %cst_30 [1] : vector<4x256xf32> to vector<4xf32>
    %44 = vector.shape_cast %43 : vector<4xf32> to vector<4x1xf32>
    %45 = arith.subf %44, %25 : vector<4x1xf32>
    %46 = arith.addf %42, %45 : vector<4x1xf32>
    %c0_31 = arith.constant 0 : index
    %c0_32 = arith.constant 0 : index
    %c0_33 = arith.constant 0 : index
    %c0_34 = arith.constant 0 : index
    %47 = vector.load %arg7[%c0_31, %c0_32, %c0_33, %c0_34] : memref<1x1x4x1xf32, #tpu.memory_space<vmem>>, vector<1x1x4x1xf32>
    %48 = vector.shape_cast %47 : vector<1x1x4x1xf32> to vector<4x1xf32>
    %49 = vector.shape_cast %46 : vector<4x1xf32> to vector<1x1x4x1xf32>
    tpu.vector_store %arg7[%c0_31, %c0_32, %c0_33, %c0_34], %49 {strides = array<i32>} : memref<1x1x4x1xf32, #tpu.memory_space<vmem>>, vector<1x1x4x1xf32>,
    %cst_35 = arith.constant dense<0.000000e+00> : vector<256xf32>
    %50 = vector.multi_reduction <add>, %21, %cst_35 [0] : vector<4x256xf32> to vector<256xf32>
    %51 = vector.shape_cast %50 : vector<256xf32> to vector<1x256xf32>
    %cst_36 = arith.constant 1.000000e+00 : f32
    %52 = vector.broadcast %cst_36 : f32 to vector<1x256xf32>
    %53 = arith.subf %52, %51 : vector<1x256xf32>
    %54 = arith.mulf %53, %53 : vector<1x256xf32>
    %cst_37 = arith.constant 1.000000e-10 : f32
    %55 = vector.broadcast %cst_37 : f32 to vector<1x256xf32>
    %56 = arith.addf %51, %55 : vector<1x256xf32>
    %57 = math.log %56 : vector<1x256xf32>
    %cst_38 = arith.constant 0.000000e+00 : f32
    %58 = vector.broadcast %cst_38 : f32 to vector<1x256xf32>
    %59 = arith.subf %58, %57 : vector<1x256xf32>
    %60 = arith.mulf %54, %59 : vector<1x256xf32>
    %c0_39 = arith.constant 0 : index
    %c0_40 = arith.constant 0 : index
    %c0_41 = arith.constant 0 : index
    %c0_42 = arith.constant 0 : index
    %61 = vector.load %arg8[%c0_39, %c0_40, %c0_41, %c0_42] : memref<1x1x1x1xf32, #tpu.memory_space<vmem>>, vector<1x1x1x1xf32>
    %62 = vector.shape_cast %61 : vector<1x1x1x1xf32> to vector<1x1xf32>
    %cst_43 = arith.constant dense<0.000000e+00> : vector<1xf32>
    %63 = vector.multi_reduction <add>, %60, %cst_43 [1] : vector<1x256xf32> to vector<1xf32>
    %64 = vector.shape_cast %63 : vector<1xf32> to vector<1x1xf32>
    %65 = arith.addf %62, %64 : vector<1x1xf32>
    %c0_44 = arith.constant 0 : index
    %c0_45 = arith.constant 0 : index
    %c0_46 = arith.constant 0 : index
    %c0_47 = arith.constant 0 : index
    %66 = vector.load %arg8[%c0_44, %c0_45, %c0_46, %c0_47] : memref<1x1x1x1xf32, #tpu.memory_space<vmem>>, vector<1x1x1x1xf32>
    %67 = vector.shape_cast %66 : vector<1x1x1x1xf32> to vector<1x1xf32>
    %68 = vector.shape_cast %65 : vector<1x1xf32> to vector<1x1x1x1xf32>
    tpu.vector_store %arg8[%c0_44, %c0_45, %c0_46, %c0_47], %68 {strides = array<i32>} : memref<1x1x1x1xf32, #tpu.memory_space<vmem>>, vector<1x1x1x1xf32>,
    return
  }
  func.func @transform_0(%arg0: i32, %arg1: i32, %arg2: i32) -> (i32, i32, i32) {
    %c1_i32 = arith.constant 1 : i32
    %0 = arith.muli %arg1, %c1_i32 : i32
    %1 = arith.addi %0, %arg2 : i32
    %c0_i32 = arith.constant 0 : i32
    %c0_i32_0 = arith.constant 0 : i32
    return %arg0, %c0_i32, %1 : i32, i32, i32
  }
  func.func @transform_1(%arg0: i32, %arg1: i32, %arg2: i32) -> (i32, i32, i32) {
    %c1_i32 = arith.constant 1 : i32
    %0 = arith.muli %arg1, %c1_i32 : i32
    %1 = arith.addi %0, %arg2 : i32
    %c0_i32 = arith.constant 0 : i32
    %c0_i32_0 = arith.constant 0 : i32
    return %arg0, %c0_i32, %1 : i32, i32, i32
  }
  func.func @transform_2(%arg0: i32, %arg1: i32, %arg2: i32) -> (i32, i32, i32, i32) {
    %c0_i32 = arith.constant 0 : i32
    %c0_i32_0 = arith.constant 0 : i32
    %c0_i32_1 = arith.constant 0 : i32
    return %arg0, %arg1, %c0_i32, %c0_i32_0 : i32, i32, i32, i32
  }
  func.func @transform_3(%arg0: i32, %arg1: i32, %arg2: i32) -> (i32, i32, i32, i32) {
    %c0_i32 = arith.constant 0 : i32
    %c0_i32_0 = arith.constant 0 : i32
    %c0_i32_1 = arith.constant 0 : i32
    return %arg0, %arg1, %c0_i32, %c0_i32_0 : i32, i32, i32, i32
  }
  func.func @transform_4(%arg0: i32, %arg1: i32, %arg2: i32) -> (i32, i32, i32, i32) {
    %c0_i32 = arith.constant 0 : i32
    %c0_i32_0 = arith.constant 0 : i32
    %c0_i32_1 = arith.constant 0 : i32
    return %arg0, %arg1, %c0_i32, %c0_i32_0 : i32, i32, i32, i32
  }
  func.func @transform_5(%arg0: i32, %arg1: i32, %arg2: i32) -> (i32, i32, i32, i32) {
    %c0_i32 = arith.constant 0 : i32
    %c0_i32_0 = arith.constant 0 : i32
    %c0_i32_1 = arith.constant 0 : i32
    return %arg0, %arg1, %c0_i32, %c0_i32_0 : i32, i32, i32, i32
  }
}

</mosaic_0001>

<bundles_post_ra>
// kernel: focal_dc_loss.1
= control target key start
LH: loop header
LB: loop body
LE: loop exit
PB: predicated region body
PF: predicated region fallthrough
CT: control target
= control target key end

     0   :  { %s827_s18 = smov 0   ;;  %s829_s19 = smov 0   ;;  %s936_s0 = inlined_call_operand.vmem [shape: f32[2,4,256], index: 0, kind: input, shape index: {}]   ;;  %s937_s1 = inlined_call_operand.vmem [shape: s32[2,1,256], index: 1, kind: input, shape index: {}]   ;;  %s938_s2 = inlined_call_operand.vmem [shape: f32[2,1,4,1], index: 2, kind: output, shape index: {0}]   ;;  %s939_s3 = inlined_call_operand.vmem [shape: f32[2,1,4,1], index: 3, kind: output, shape index: {1}]   ;;  %s940_s4 = inlined_call_operand.vmem [shape: f32[2,1,4,1], index: 4, kind: output, shape index: {2}]   ;;  %s941_s5 = inlined_call_operand.vmem [shape: f32[2,1,1,1], index: 5, kind: output, shape index: {3}]  }
   0x1   :  { %s831_s20 = smov 0  }
   0x2 LB: > { %s35_s21 = sadd.s32 1, %s790_s19  ;;  %p724_p0 = scmp.ge.s32.totalorder %s794_s20, 1  ;;  %s794_s20 = sphi %s831_s20, %s16_s20   ;;  %s790_s19 = sphi %s829_s19, %s943_s19   ;;  %s786_s18 = sphi %s827_s18, %s942_s18  }
   0x3   : > { %p37_p1 = scmp.ge.s32.totalorder %s35_s21, 2  ;;  %p252_p2 = scmp.lt.s32.totalorder %s794_s20, 3 }
   0x5   : > { %s945_s21 = smov (%p37_p1, %s35_s21), 0  ;;  %p253_p3 = pnand %p724_p0, %p252_p2 }
   0x6   : > { %p318_p4 = scmp.lt.s32.totalorder (!%p253_p3), %s786_s18, 1  ;;  %v427_v0 = vlaneseq (!%p253_p3)  ;;  %vm381_vm0 = vcmask (!%p253_p3), 1043456   ;;  %vm370_vm1 = vcmask (!%p253_p3), 3072   ;;  %v796_v11 = vmov (!%p253_p3), 0.0  }
   0x7   : > { %256 = sbr.rel (%p253_p3) target bundleno = 262 (0x106), region = 28  ;;  %vm374_vm4 = vcmask (!%p253_p3), 0  }
   0x8   : > { %v847_v1 = vshrl.u32 (!%p253_p3), %v427_v0, 7 }
   0xa   : > { %v431_v2 = vsub.s32 (!%p253_p3), 0, %v847_v1  ;;  %v435_v3 = vsub.s32 (!%p253_p3), 1, %v847_v1 }
   0xe   : > { %s947_s18 = smov (!%p318_p4, %s786_s18), 1 }
   0xf   : > { %s735_s22 = sshll.u32 %s947_s18, 3  ;;  %s727_s23 = sshll.u32 %s947_s18, 1 }
  0x10   : > { %s325_s26 = scalar_lea.vmem %s936_s0, %s735_s22  ;;  %s336_s29 = scalar_lea.vmem %s937_s1, %s727_s23 }
  0x11   : > { %v376_v4 = vld [vmem:[%s325_s26] sm:$0xff]  ;;  %s860_s30 = sshll.u32 %s947_s18, 2  ;;  %s365_s17 = scalar_lea.vmem %s941_s5, %s947_s18 }
  0x12   : > { %v377_v5 = vld [vmem:[%s336_s29] sm:$0x3]  ;;  %v379_v6 = vcombine.high %v376_v4, %v376_v4  ;;  %v382_v7 = vsel %vm381_vm0, %v376_v4, -inf  ;;  %s867_s8 = scalar_lea.vmem %s938_s2, %s860_s30  ;;  %s897_s11 = scalar_lea.vmem %s940_s4, %s860_s30  ;;  %375 = vst.msk [vmem:[%s365_s17] sm:$0x1] %vm374_vm4, %v796_v11 }
  0x13   : > { %v432_v8 = vrot.slane %v377_v5, %v431_v2  ;;  %v436_v9 = vrot.slane %v377_v5, %v435_v3  ;;  %v383_v10 = vrot.slane %v382_v7, 4  ;;  %371 = vst.msk [vmem:[%s867_s8] sm:$0xf] %vm370_vm1, %v796_v11  ;;  %373 = vst.msk [vmem:[%s897_s11] sm:$0xf] %vm370_vm1, %v796_v11  ;;  %s906_s14 = scalar_lea.vmem %s939_s3, %s860_s30 }
  0x14   : > { %v389_v12 = vsel %vm381_vm0, %v379_v6, -inf  ;;  %372 = vst.msk [vmem:[%s906_s14] sm:$0xf] %vm370_vm1, %v796_v11 }
  0x15   : > { %vm437_vm2 = vcmp.eq.s32.totalorder %v847_v1, %v432_v8  ;;  %vm438_vm3 = vcmp.eq.s32.totalorder %v847_v1, %v436_v9  ;;  %v384_v13 = vmax.f32 %v382_v7, %v383_v10  ;;  %v390_v14 = vrot.slane %v389_v12, 4 }
  0x16   : > { %v731_v15 = vsel %vm437_vm2, 1.0, %v796_v11  ;;  %v732_v16 = vsel %vm438_vm3, 1.0, %v796_v11 }
  0x17   : > { %v467_v17 = vsel %vm381_vm0, %v731_v15, 0.0  ;;  %v468_v18 = vsel %vm381_vm0, %v732_v16, 0.0  ;;  %v385_v19 = vrot.slane %v384_v13, 2  ;;  %v391_v20 = vmax.f32 %v389_v12, %v390_v14 }
  0x18   : > { %v469_v21 = vadd.f32 %v468_v18, %v467_v17 }
  0x19   : > { %v386_v22 = vmax.f32 %v384_v13, %v385_v19  ;;  %v392_v23 = vrot.slane %v391_v20, 2 }
  0x1a   : > { %470 = vadd.xlane.f32.xlu1 %v469_v21 }
  0x1b   : > { %v387_v24 = vrot.slane %v386_v22, 1  ;;  %v393_v25 = vmax.f32 %v391_v20, %v392_v23 }
  0x1d   : > { %v388_v26 = vmax.f32 %v386_v22, %v387_v24  ;;  %v394_v27 = vrot.slane %v393_v25, 1 }
  0x1f   : > { %v395_v28 = vmax.f32 %v393_v25, %v394_v27  ;;  %v453_v25 = vld [vmem:[%s867_s8] sm:$0xf] }
  0x21   : > { %v398_v29 = vcombine.low %v388_v26, %v395_v28  ;;  %v466_v28 = vld [vmem:[%s897_s11] sm:$0xf] }
  0x23   : > { %v400_v30 = vsub.f32 %v376_v4, %v398_v29 }
  0x25   : > { %v401_v31 = vmul.f32 1.442695, %v400_v30 }
  0x27   : > { %762 = vpow2.f32 %v401_v31 }
  0x31   : > { %v763_v32 = vpop.eup %762 }
  0x32   : > { %v404_v33 = vcombine.high %v763_v32, %v763_v32  ;;  %v406_v34 = vsel %vm381_vm0, %v763_v32, 0.0 }
  0x33   : > { %v407_v35 = vrot.slane %v406_v34, 4 }
  0x34   : > { %v413_v36 = vsel %vm381_vm0, %v404_v33, 0.0 }
  0x35   : > { %v408_v37 = vadd.f32 %v407_v35, %v406_v34  ;;  %v414_v38 = vrot.slane %v413_v36, 4  ;;  %v501_v35 = vld [vmem:[%s365_s17] sm:$0x1] }
  0x37   : > { %v409_v39 = vrot.slane %v408_v37, 2  ;;  %v415_v40 = vadd.f32 %v414_v38, %v413_v36 }
  0x39   : > { %v410_v41 = vadd.f32 %v409_v39, %v408_v37  ;;  %v416_v42 = vrot.slane %v415_v40, 2 }
  0x3b   : > { %v411_v43 = vrot.slane %v410_v41, 1  ;;  %v417_v44 = vadd.f32 %v416_v42, %v415_v40 }
  0x3d   : > { %v412_v45 = vadd.f32 %v411_v43, %v410_v41  ;;  %v418_v46 = vrot.slane %v417_v44, 1 }
  0x3f   : > { %v419_v47 = vadd.f32 %v418_v46, %v417_v44  ;;  %764 = vrcp.f32 %v412_v45 }
  0x41   : > { %766 = vrcp.f32 %v419_v47 }
  0x49   : > { %v765_v48 = vpop.eup %764 }
  0x4b   : > { %v767_v49 = vpop.eup %766 }
  0x4c   : > { %v424_v50 = vcombine.low %v765_v48, %v767_v49 }
  0x4e   : > { %v426_v51 = vmul.f32 %v763_v32, %v424_v50  ;;  %v457_v32 = vld [vmem:[%s906_s14] sm:$0xf] }
  0x50   : > { %v440_v52 = vcombine.high %v426_v51, %v426_v51  ;;  %v442_v53 = vsel %vm437_vm2, %v426_v51, 0.0  ;;  %v458_v58 = vsel %vm381_vm0, %v426_v51, 0.0 }
  0x51   : > { %v448_v54 = vsel %vm381_vm0, %v442_v53, 0.0 }
  0x52   : > { %v443_v55 = vsel %vm438_vm3, %v440_v52, 0.0  ;;  %v475_v56 = vrot.slane %v448_v54, 4  ;;  %v459_v59 = vsel %vm381_vm0, %v440_v52, 0.0 }
  0x53   : > { %v449_v57 = vsel %vm381_vm0, %v443_v55, 0.0  ;;  %v460_v2 = vadd.f32 %v459_v59, %v458_v58 }
  0x54   : > { %v450_v60 = vadd.f32 %v449_v57, %v448_v54  ;;  %v476_v61 = vadd.f32 %v475_v56, %v448_v54  ;;  %v481_v62 = vrot.slane %v449_v57, 4 }
  0x56   : > { %v477_v63 = vrot.slane %v476_v61, 2  ;;  %v482_v0 = vadd.f32 %v481_v62, %v449_v57  ;;  %451 = vadd.xlane.f32.xlu0 %v450_v60 }
  0x58   : > { %v478_v3 = vadd.f32 %v477_v63, %v476_v61  ;;  %v483_v4 = vrot.slane %v482_v0, 2 }
  0x5a   : > { %v479_v1 = vrot.slane %v478_v3, 1  ;;  %v484_v5 = vadd.f32 %v483_v4, %v482_v0  ;;  %461 = vadd.xlane.f32.xlu0 %v460_v2 }
  0x5c   : > { %v485_v6 = vrot.slane %v484_v5, 1  ;;  %v480_v7 = vadd.f32 %v479_v1, %v478_v3 }
  0x5e   : > { %v486_v8 = vadd.f32 %v485_v6, %v484_v5  ;;  %v491_v9 = vadd.f32 1e-10, %v480_v7  ;;  %v487_v12 = vsub.f32 1.0, %v480_v7 }
  0x60   : > { %v492_v10 = vadd.f32 1e-10, %v486_v8  ;;  %768 = vlog2.f32 %v491_v9  ;;  %v488_v13 = vsub.f32 1.0, %v486_v8  ;;  %v489_v15 = vmul.f32 %v487_v12, %v487_v12 }
  0x62   : > { %770 = vlog2.f32 %v492_v10  ;;  %v490_v18 = vmul.f32 %v488_v13, %v488_v13 }
  0x6a   : > { %v769_v14 = vpop.eup %768 }
  0x6b   : > { %v494_v16 = vmul.f32 0.6931472, %v769_v14 }
  0x6c   : > { %v771_v17 = vpop.eup %770 }
  0x6d   : > { %v496_v19 = vmul.f32 0.6931472, %v771_v17  ;;  %v497_v20 = vsub.f32 0.0, %v494_v16 }
  0x6f   : > { %v498_v21 = vsub.f32 0.0, %v496_v19  ;;  %v499_v22 = vmul.f32 %v497_v20, %v489_v15 }
  0x71   : > { %v500_v23 = vmul.f32 %v498_v21, %v490_v18 }
  0x73   : > { %v502_v24 = vadd.f32 %v500_v23, %v499_v22 }
  0x75   : > { %503 = vadd.xlane.f32.xlu1 %v502_v24 }
  0xa7   : > { %v471_v26 = vpop.xlane.xlu1 %470 }
  0xe3   : > { %v452_v27 = vpop.xlane.xlu0 %451 }
  0xe4   : > { %v454_v29 = vadd.f32 %v453_v25, %v452_v27  ;;  %v472_v30 = vsub.f32 %v471_v26, %v452_v27 }
  0xe6   : > { %456 = vst.msk [vmem:[%s867_s8] sm:$0xf] %vm370_vm1, %v454_v29  ;;  %v473_v31 = vadd.f32 %v472_v30, %v466_v28 }
  0xe7   : > { %v462_v33 = vpop.xlane.xlu0 %461 }
  0xe8   : > { %474 = vst.msk [vmem:[%s897_s11] sm:$0xf] %vm370_vm1, %v473_v31  ;;  %v463_v11 = vsub.f32 %v462_v33, %v452_v27 }
  0xea   : > { %v464_v34 = vadd.f32 %v463_v11, %v457_v32 }
  0xec   : > { %465 = vst.msk [vmem:[%s906_s14] sm:$0xf] %vm370_vm1, %v464_v34 }
 0x102   : > { %v504_v36 = vpop.xlane.xlu1 %503 }
 0x103   : > { %v505_v37 = vadd.f32 %v504_v36, %v501_v35 }
 0x105   : > { %507 = vst.msk [vmem:[%s365_s17] sm:$0x1] %vm374_vm4, %v505_v37 }
 0x106 PF: > { %s16_s20 = sadd.s32 1, %s794_s20   ;;  %s942_s18 = smov %s790_s19 }
 0x107   : > { %p13_p5 = scmp.ge.s32.totalorder %s16_s20, 4   ;;  %s943_s19 = smov %s945_s21 }
 0x109   :  { %15 = sbr.rel (!%p13_p5) target bundleno = 2 (0x2), region = 101 }

</bundles_post_ra>
